<compile_context>
chip_gen: v5e
topology: v5e:2x2
jax: 0.10.0
libtpu: 0.0.40
codegen_flags: <defaults>
</compile_context>

<pallas_src>
import jax
import jax.numpy as jnp
from jax.experimental import pallas as pl
from jax.experimental.pallas import tpu as pltpu


def _round_up(x, m):
    return ((x + m - 1) // m) * m


def _neumf_kernel(uidx_ref, iidx_ref, utbl_ref, itbl_ref, out_ref):
    """One batch tile: one-hot MXU gather from VMEM-resident tables, product,
    lane reduce (w and bias already folded into the tables), sigmoid."""
    tb = out_ref.shape[0]
    nu = utbl_ref.shape[0]
    ni = itbl_ref.shape[0]

    uidx = uidx_ref[...]                                   # (tb, 1) int32
    iidx = iidx_ref[...]                                   # (tb, 1) int32

    # One-hot gather on the MXU (tables stay resident in VMEM across the grid).
    u_oh = (jax.lax.broadcasted_iota(jnp.int32, (tb, nu), 1) == uidx).astype(jnp.float32)
    i_oh = (jax.lax.broadcasted_iota(jnp.int32, (tb, ni), 1) == iidx).astype(jnp.float32)
    u_rows = jnp.dot(u_oh, utbl_ref[...], preferred_element_type=jnp.float32)   # (tb, Dp)
    i_rows = jnp.dot(i_oh, itbl_ref[...], preferred_element_type=jnp.float32)   # (tb, Dp)

    # affine_w folded into user table; bias folded into padded lane D (u=b, i=1).
    logits = jnp.sum(u_rows * i_rows, axis=-1, keepdims=True)                   # (tb, 1)
    out_ref[...] = jax.nn.sigmoid(logits)


def neumf_forward(user_indices, item_indices, packed, *, max_tile_b=256):
    user_tbl = packed["user_table"]                        # [nu_p, Dp] f32 (w folded, bias lane)
    item_tbl = packed["item_table"]                        # [ni_p, Dp] f32 (ones in bias lane)
    nu_p, dp = int(user_tbl.shape[0]), int(user_tbl.shape[1])
    ni_p = int(item_tbl.shape[0])

    B = int(user_indices.shape[0])
    # Cap tiles at 256 rows so large batches give >=2 grid tiles (v7x megacore).
    tb = min(max_tile_b, _round_up(B, 128))
    num_tiles = pl.cdiv(B, tb)
    bp = num_tiles * tb

    # Pad index arrays (pad rows select row 0; their outputs are discarded).
    uidx = jnp.zeros((bp, 1), jnp.int32).at[:B, 0].set(user_indices.astype(jnp.int32))
    iidx = jnp.zeros((bp, 1), jnp.int32).at[:B, 0].set(item_indices.astype(jnp.int32))

    grid_spec = pltpu.PrefetchScalarGridSpec(
        num_scalar_prefetch=0,
        grid=(num_tiles,),
        in_specs=[
            pl.BlockSpec((tb, 1), lambda t: (t, 0)),        # user indices (per tile)
            pl.BlockSpec((tb, 1), lambda t: (t, 0)),        # item indices (per tile)
            pl.BlockSpec((nu_p, dp), lambda t: (0, 0)),     # user table, VMEM-resident
            pl.BlockSpec((ni_p, dp), lambda t: (0, 0)),     # item table, VMEM-resident
        ],
        out_specs=pl.BlockSpec((tb, 1), lambda t: (t, 0)),
    )

    # VMEM budget: actual footprint + headroom (not a blanket 32 MiB reservation).
    vmem_bytes = 4 * (
        2 * (nu_p + ni_p) * dp          # resident tables (x2 pipeline buffers)
        + 2 * tb * (nu_p + ni_p)        # in-kernel one-hot temporaries
        + 4 * tb * dp                   # gathered rows + product temporaries
        + 8 * tb                        # index / output blocks (double-buffered)
    )
    vmem_limit = int(min(100 * 1024 * 1024, max(4 * 1024 * 1024, vmem_bytes + (1 << 20))))

    out = pl.pallas_call(
        _neumf_kernel,
        out_shape=jax.ShapeDtypeStruct((bp, 1), jnp.float32),
        grid_spec=grid_spec,
        compiler_params=pltpu.CompilerParams(
            dimension_semantics=("parallel",),
            vmem_limit_bytes=vmem_limit,
        ),
    )(uidx, iidx, user_tbl, item_tbl)

    return out[:B]


def init_params(key, num_users, num_items, latent_dim_gmf, latent_dim_cde):
    # weight_init_gaussian: normal(0, 0.01) for Embedding / Linear weights.
    ks = jax.random.split(key, 6)
    std = 0.01
    d = latent_dim_cde + latent_dim_gmf
    bound = 1.0 / jnp.sqrt(jnp.float32(d))
    return {
        "emb_user_mf": std * jax.random.normal(ks[0], (num_users, latent_dim_gmf), jnp.float32),
        "emb_item_mf": std * jax.random.normal(ks[1], (num_items, latent_dim_gmf), jnp.float32),
        "emb_user_mlp": std * jax.random.normal(ks[2], (num_users, latent_dim_cde), jnp.float32),
        "emb_item_mlp": std * jax.random.normal(ks[3], (num_items, latent_dim_cde), jnp.float32),
        "affine_w": std * jax.random.normal(ks[4], (1, d), jnp.float32),
        "affine_b": jax.random.uniform(ks[5], (1,), jnp.float32, -bound, bound),
    }


def pack_params(params):
    # torch forward concatenates [mlp_vector, mf_vector]; keep that lane order.
    # Fold affine_w into the user table and the bias into an extra lane so the
    # kernel is a pure product + reduce.
    u_cat = jnp.concatenate([params["emb_user_mlp"], params["emb_user_mf"]], axis=-1)
    i_cat = jnp.concatenate([params["emb_item_mlp"], params["emb_item_mf"]], axis=-1)
    w = params["affine_w"].reshape(-1).astype(jnp.float32)          # (D,)
    b = jnp.asarray(params["affine_b"]).reshape(()).astype(jnp.float32)

    user = u_cat.astype(jnp.float32) * w[None, :]
    item = i_cat.astype(jnp.float32)
    nu, d = user.shape
    ni = item.shape[0]

    dp = _round_up(d + 1, 128)          # pad to full 128-lane rows (+1 bias lane)
    nu_p = _round_up(nu, 8)
    ni_p = _round_up(ni, 8)

    user_p = (jnp.zeros((nu_p, dp), jnp.float32)
              .at[:nu, :d].set(user)
              .at[:nu, d].set(b))
    item_p = (jnp.zeros((ni_p, dp), jnp.float32)
              .at[:ni, :d].set(item)
              .at[:ni, d].set(1.0))
    return {"user_table": user_p, "item_table": item_p}


def neumf_reference(user_indices, item_indices, params):
    # Pure-JAX reference from the ORIGINAL (unpacked) parameters.
    u_mf = params["emb_user_mf"][user_indices]
    i_mf = params["emb_item_mf"][item_indices]
    u_mlp = params["emb_user_mlp"][user_indices]
    i_mlp = params["emb_item_mlp"][item_indices]
    mf_vector = u_mf * i_mf
    mlp_vector = u_mlp * i_mlp          # CDECF surrogate (see TODO at top)
    vector = jnp.concatenate([mlp_vector, mf_vector], axis=-1)
    logits = vector @ params["affine_w"].T + params["affine_b"][None, :]
    return jax.nn.sigmoid(logits)


if __name__ == "__main__":
    num_users, num_items = 32, 64
    latent_dim_gmf, latent_dim_cde = 16, 32
    batch = 8

    key = jax.random.PRNGKey(0)
    pkey, ukey, ikey = jax.random.split(key, 3)
    params = init_params(pkey, num_users, num_items, latent_dim_gmf, latent_dim_cde)
    packed = pack_params(params)

    user_indices = jax.random.randint(ukey, (batch,), 0, num_users, dtype=jnp.int32)
    item_indices = jax.random.randint(ikey, (batch,), 0, num_items, dtype=jnp.int32)

    rating = neumf_forward(user_indices, item_indices, packed)
    jax.block_until_ready(rating)

    expected = neumf_reference(user_indices, item_indices, params)
    assert rating.shape == (batch, 1)
    assert bool(jnp.all(jnp.isfinite(rating)))
    assert bool(jnp.all((rating >= 0.0) & (rating <= 1.0)))
    assert bool(jnp.allclose(rating, expected, rtol=1e-5, atol=1e-6))
    print("KERNEL_OK")
</pallas_src>

<mosaic_0001>
module attributes {stable_mosaic.version = 11 : i64} {
  func.func @_neumf_kernel(%arg0: i32, %arg1: memref<128x1xi32, #tpu.memory_space<vmem>>, %arg2: memref<128x1xi32, #tpu.memory_space<vmem>>, %arg3: memref<32x128xf32, #tpu.memory_space<vmem>>, %arg4: memref<64x128xf32, #tpu.memory_space<vmem>>, %arg5: memref<128x1xf32, #tpu.memory_space<vmem>>) attributes {dimension_semantics = [#tpu.dimension_semantics<parallel>], iteration_bounds = array<i64: 1>, scalar_prefetch = 0 : i64, scratch_operands = 0 : i64, tpu.core_type = #tpu.core_type<tc>, window_params = [{transform_indices = @transform_0, window_bounds = array<i64: 128, 1>}, {transform_indices = @transform_1, window_bounds = array<i64: 128, 1>}, {pipeline_mode = #tpu.pipeline_mode<synchronous>, transform_indices = @transform_2, window_bounds = array<i64: 32, 128>}, {pipeline_mode = #tpu.pipeline_mode<synchronous>, transform_indices = @transform_3, window_bounds = array<i64: 64, 128>}, {transform_indices = @transform_4, window_bounds = array<i64: 128, 1>}]} {
    %c0 = arith.constant 0 : index
    %c0_0 = arith.constant 0 : index
    %0 = vector.load %arg1[%c0, %c0_0] : memref<128x1xi32, #tpu.memory_space<vmem>>, vector<128x1xi32>
    %c0_1 = arith.constant 0 : index
    %c0_2 = arith.constant 0 : index
    %1 = vector.load %arg2[%c0_1, %c0_2] : memref<128x1xi32, #tpu.memory_space<vmem>>, vector<128x1xi32>
    %2 = tpu.iota {dimensions = array<i32: 1>} : vector<128x32xi32>
    %3 = vector.broadcast %0 : vector<128x1xi32> to vector<128x32xi32>
    %4 = arith.cmpi eq, %2, %3 : vector<128x32xi32>
    %5 = arith.extui %4 : vector<128x32xi1> to vector<128x32xi32>
    %6 = arith.sitofp %5 : vector<128x32xi32> to vector<128x32xf32>
    %7 = tpu.iota {dimensions = array<i32: 1>} : vector<128x64xi32>
    %8 = vector.broadcast %1 : vector<128x1xi32> to vector<128x64xi32>
    %9 = arith.cmpi eq, %7, %8 : vector<128x64xi32>
    %10 = arith.extui %9 : vector<128x64xi1> to vector<128x64xi32>
    %11 = arith.sitofp %10 : vector<128x64xi32> to vector<128x64xf32>
    %c0_3 = arith.constant 0 : index
    %c0_4 = arith.constant 0 : index
    %12 = vector.load %arg3[%c0_3, %c0_4] : memref<32x128xf32, #tpu.memory_space<vmem>>, vector<32x128xf32>
    %cst = arith.constant dense<0.000000e+00> : vector<128x128xf32>
    %13 = tpu.matmul %6, %12, %cst {dimension_numbers = #tpu.dot_dimension_numbers<[1], [0], [0], [1], [0, 0, 1, 1], [], []>} : vector<128x32xf32>, vector<32x128xf32>, vector<128x128xf32> -> vector<128x128xf32>
    %c0_5 = arith.constant 0 : index
    %c0_6 = arith.constant 0 : index
    %14 = vector.load %arg4[%c0_5, %c0_6] : memref<64x128xf32, #tpu.memory_space<vmem>>, vector<64x128xf32>
    %cst_7 = arith.constant dense<0.000000e+00> : vector<128x128xf32>
    %15 = tpu.matmul %11, %14, %cst_7 {dimension_numbers = #tpu.dot_dimension_numbers<[1], [0], [0], [1], [0, 0, 1, 1], [], []>} : vector<128x64xf32>, vector<64x128xf32>, vector<128x128xf32> -> vector<128x128xf32>
    %16 = arith.mulf %13, %15 : vector<128x128xf32>
    %cst_8 = arith.constant dense<0.000000e+00> : vector<128xf32>
    %17 = vector.multi_reduction <add>, %16, %cst_8 [1] : vector<128x128xf32> to vector<128xf32>
    %18 = vector.shape_cast %17 : vector<128xf32> to vector<128x1xf32>
    %19 = arith.negf %18 : vector<128x1xf32>
    %20 = math.exp %19 : vector<128x1xf32>
    %cst_9 = arith.constant 1.000000e+00 : f32
    %21 = vector.broadcast %cst_9 : f32 to vector<128x1xf32>
    %22 = arith.addf %21, %20 : vector<128x1xf32>
    %23 = arith.divf %21, %22 : vector<128x1xf32>
    %c0_10 = arith.constant 0 : index
    %c0_11 = arith.constant 0 : index
    %24 = vector.load %arg5[%c0_10, %c0_11] : memref<128x1xf32, #tpu.memory_space<vmem>>, vector<128x1xf32>
    tpu.vector_store %arg5[%c0_10, %c0_11], %23 {strides = array<i32>} : memref<128x1xf32, #tpu.memory_space<vmem>>, vector<128x1xf32>,
    return
  }
  func.func @transform_0(%arg0: i32) -> (i32, i32) {
    %c0_i32 = arith.constant 0 : i32
    %c0_i32_0 = arith.constant 0 : i32
    return %arg0, %c0_i32 : i32, i32
  }
  func.func @transform_1(%arg0: i32) -> (i32, i32) {
    %c0_i32 = arith.constant 0 : i32
    %c0_i32_0 = arith.constant 0 : i32
    return %arg0, %c0_i32 : i32, i32
  }
  func.func @transform_2(%arg0: i32) -> (i32, i32) {
    %c0_i32 = arith.constant 0 : i32
    %c0_i32_0 = arith.constant 0 : i32
    %c0_i32_1 = arith.constant 0 : i32
    return %c0_i32, %c0_i32_0 : i32, i32
  }
  func.func @transform_3(%arg0: i32) -> (i32, i32) {
    %c0_i32 = arith.constant 0 : i32
    %c0_i32_0 = arith.constant 0 : i32
    %c0_i32_1 = arith.constant 0 : i32
    return %c0_i32, %c0_i32_0 : i32, i32
  }
  func.func @transform_4(%arg0: i32) -> (i32, i32) {
    %c0_i32 = arith.constant 0 : i32
    %c0_i32_0 = arith.constant 0 : i32
    return %arg0, %c0_i32 : i32, i32
  }
}

</mosaic_0001>

<bundles_post_ra>
// kernel: tpu_custom_call.1
= control target key start
LH: loop header
LB: loop body
LE: loop exit
PB: predicated region body
PF: predicated region fallthrough
CT: control target
= control target key end

     0   :  { %v1017_v0 = vmov 0   ;;  %v49_v39 = vlaneseq  ;;  %vm247_vm0 = vcmask 261120   ;;  %v1018_v47 = vmov 0.0   ;;  %s1403_s0 = inlined_call_operand.vmem [shape: s32[128,1], index: 0, kind: input, shape index: {}]   ;;  %s1404_s1 = inlined_call_operand.vmem [shape: s32[128,1], index: 1, kind: input, shape index: {}]   ;;  %s1405_s2 = inlined_call_operand.vmem [shape: f32[32,128], index: 2, kind: input, shape index: {}]   ;;  %s1406_s3 = inlined_call_operand.vmem [shape: f32[64,128], index: 3, kind: input, shape index: {}]   ;;  %s1407_s4 = inlined_call_operand.vmem [shape: f32[128,1], index: 4, kind: output, shape index: {}]  }
   0x1   :  { %952 = vset.pattern.permute.xlu2 %v1017_v0  ;;  %951 = vset.pattern.permute.xlu1 %v1017_v0  ;;  %v26_v1 = vld [vmem:[%s1403_s0 + $0x48] sm:$0xff]  ;;  %v17_v3 = vld [vmem:[%s1403_s0] sm:$0xff]  ;;  %v27_v7 = vld [vmem:[%s1403_s0 + $0x50] sm:$0xff]  ;;  %vm369_vm5 = vcmask 523264  }
   0x2   :  { %v18_v2 = vld [vmem:[%s1403_s0 + $0x8] sm:$0xff]  ;;  %950 = vset.pattern.permute.xlu0 %v1017_v0  ;;  %79 = vperm.xlu2 %952, %v26_v1   ;;  %v33_v5 = vld [vmem:[%s1404_s1] sm:$0xff]  ;;  %v19_v9 = vld [vmem:[%s1403_s0 + $0x10] sm:$0xff]  ;;  %v1167_v43 = vand.u32 127, %v49_v39 }
   0x3   :  { %55 = vperm.xlu1 %951, %v18_v2   ;;  %52 = vperm.xlu0 %950, %v17_v3   ;;  %v42_v4 = vld [vmem:[%s1404_s1 + $0x48] sm:$0xff]  ;;  %v41_v6 = vld [vmem:[%s1404_s1 + $0x40] sm:$0xff]  ;;  %v35_v10 = vld [vmem:[%s1404_s1 + $0x10] sm:$0xff] }
   0x4   :  { %v34_v8 = vld [vmem:[%s1404_s1 + $0x8] sm:$0xff]  ;;  %v20_v11 = vld [vmem:[%s1403_s0 + $0x18] sm:$0xff]  ;;  %v43_v12 = vld [vmem:[%s1404_s1 + $0x50] sm:$0xff] }
   0x5   :  { %v21_v13 = vld [vmem:[%s1403_s0 + $0x20] sm:$0xff]  ;;  %v44_v14 = vld [vmem:[%s1404_s1 + $0x58] sm:$0xff]  ;;  %v30_v19 = vld [vmem:[%s1403_s0 + $0x68] sm:$0xff] }
   0x6   :  { %v28_v15 = vld [vmem:[%s1403_s0 + $0x58] sm:$0xff]  ;;  %v45_v16 = vld [vmem:[%s1404_s1 + $0x60] sm:$0xff]  ;;  %v22_v21 = vld [vmem:[%s1403_s0 + $0x28] sm:$0xff] }
   0x7   :  { %v29_v17 = vld [vmem:[%s1403_s0 + $0x60] sm:$0xff]  ;;  %v36_v18 = vld [vmem:[%s1404_s1 + $0x18] sm:$0xff]  ;;  %v38_v22 = vld [vmem:[%s1404_s1 + $0x28] sm:$0xff] }
   0x8   :  { %v37_v20 = vld [vmem:[%s1404_s1 + $0x20] sm:$0xff]  ;;  %v23_v23 = vld [vmem:[%s1403_s0 + $0x30] sm:$0xff]  ;;  %v46_v24 = vld [vmem:[%s1404_s1 + $0x68] sm:$0xff] }
   0x9   :  { %v24_v25 = vld [vmem:[%s1403_s0 + $0x38] sm:$0xff]  ;;  %v47_v26 = vld [vmem:[%s1404_s1 + $0x70] sm:$0xff]  ;;  %v25_v36 = vld [vmem:[%s1403_s0 + $0x40] sm:$0xff] }
   0xa   :  { %175 = vperm.xlu2 %952, %v42_v4   ;;  %v31_v27 = vld [vmem:[%s1403_s0 + $0x70] sm:$0xff]  ;;  %v48_v28 = vld [vmem:[%s1404_s1 + $0x78] sm:$0xff]  ;;  %v244_v37 = vld [vmem:[%s1405_s2 + $0x8] sm:$0xff] }
   0xb   :  { %148 = vperm.xlu1 %951, %v33_v5   ;;  %172 = vperm.xlu0 %950, %v41_v6   ;;  %v32_v29 = vld [vmem:[%s1403_s0 + $0x78] sm:$0xff]  ;;  %v39_v30 = vld [vmem:[%s1404_s1 + $0x30] sm:$0xff]  ;;  %v366_v38 = vld [vmem:[%s1406_s3 + $0x28] sm:$0xff] }
   0xc   :  { %v246_v31 = vld [vmem:[%s1405_s2 + $0x18] sm:$0xff]  ;;  %v245_v33 = vld [vmem:[%s1405_s2 + $0x10] sm:$0xff]  ;;  %v243_v40 = vld [vmem:[%s1405_s2] sm:$0xff] }
   0xd   :  { %v368_v32 = vld [vmem:[%s1406_s3 + $0x38] sm:$0xff]  ;;  %308 = vmatpush.msra.mxu0 %v246_v31  ;;  %936 = vmatpush.msra.mxu3 %v246_v31  ;;  %v367_v34 = vld [vmem:[%s1406_s3 + $0x30] sm:$0xff]  ;;  %v365_v41 = vld [vmem:[%s1406_s3 + $0x20] sm:$0xff] }
   0xe   :  { %v40_v35 = vld [vmem:[%s1404_s1 + $0x38] sm:$0xff]  ;;  %426 = vmatpush.msra.mxu1 %v368_v32  ;;  %940 = vmatpush.msra.mxu2 %v368_v32  ;;  %v363_v44 = vld [vmem:[%s1406_s3 + $0x10] sm:$0xff]  ;;  %v362_v45 = vld [vmem:[%s1406_s3 + $0x8] sm:$0xff] }
   0xf   :  { %309 = vmatpush.msra.mxu0 %v245_v33  ;;  %937 = vmatpush.msra.mxu3 %v245_v33  ;;  %v364_v42 = vld [vmem:[%s1406_s3 + $0x18] sm:$0xff]  ;;  %v361_v49 = vld [vmem:[%s1406_s3] sm:$0xff] }
  0x10   :  { %427 = vmatpush.msra.mxu1 %v367_v34  ;;  %941 = vmatpush.msra.mxu2 %v367_v34 }
  0x11   :  { %310 = vmatpush.msra.mxu0 %v244_v37  ;;  %938 = vmatpush.msra.mxu3 %v244_v37 }
  0x12   :  { %82 = vperm.xlu2 %952, %v27_v7   ;;  %428 = vmatpush.msra.mxu1 %v366_v38 }
  0x13   :  { %151 = vperm.xlu1 %951, %v34_v8   ;;  %58 = vperm.xlu0 %950, %v19_v9  }
  0x14   :  { %942 = vmatpush.msra.mxu2 %v366_v38  ;;  %311 = vmatpush.msra.mxu0 %v243_v40 }
  0x15   :  { %939 = vmatpush.msra.mxu3 %v243_v40  ;;  %429 = vmatpush.msra.mxu1 %v365_v41 }
  0x16   :  { %943 = vmatpush.msra.mxu2 %v365_v41 }
  0x17   :  { %430 = vmatpush.msra.mxu1 %v364_v42 }
  0x18   :  { %944 = vmatpush.msra.mxu2 %v364_v42 }
  0x19   :  { %431 = vmatpush.msra.mxu1 %v363_v44 }
  0x1a   :  { %154 = vperm.xlu2 %952, %v35_v10   ;;  %945 = vmatpush.msra.mxu2 %v363_v44 }
  0x1b   :  { %61 = vperm.xlu1 %951, %v20_v11   ;;  %178 = vperm.xlu0 %950, %v43_v12  }
  0x1c   :  { %432 = vmatpush.msra.mxu1 %v362_v45  ;;  %946 = vmatpush.msra.mxu2 %v362_v45 }
  0x1e   :  { %433 = vmatpush.msra.mxu1 %v361_v49  ;;  %947 = vmatpush.msra.mxu2 %v361_v49 }
  0x22   :  { %64 = vperm.xlu2 %952, %v21_v13  }
  0x23   :  { %181 = vperm.xlu1 %951, %v44_v14   ;;  %85 = vperm.xlu0 %950, %v28_v15  }
  0x2a   :  { %184 = vperm.xlu2 %952, %v45_v16  }
  0x2b   :  { %88 = vperm.xlu1 %951, %v29_v17   ;;  %157 = vperm.xlu0 %950, %v36_v18  }
  0x32   :  { %91 = vperm.xlu2 %952, %v30_v19  }
  0x33   :  { %160 = vperm.xlu1 %951, %v37_v20   ;;  %67 = vperm.xlu0 %950, %v22_v21  }
  0x3a   :  { %163 = vperm.xlu2 %952, %v38_v22  }
  0x3b   :  { %70 = vperm.xlu1 %951, %v23_v23   ;;  %187 = vperm.xlu0 %950, %v46_v24  }
  0x42   :  { %73 = vperm.xlu2 %952, %v24_v25  }
  0x43   :  { %190 = vperm.xlu1 %951, %v47_v26   ;;  %94 = vperm.xlu0 %950, %v31_v27  }
  0x4a   :  { %193 = vperm.xlu2 %952, %v48_v28  }
  0x4b   :  { %97 = vperm.xlu1 %951, %v32_v29   ;;  %166 = vperm.xlu0 %950, %v39_v30  }
  0x53   :  { %169 = vperm.xlu1 %951, %v40_v35   ;;  %76 = vperm.xlu0 %950, %v25_v36  }
  0x5c   :  { %v80_v46 = vpop.permute.xlu2 %79 }
  0x5d   :  { %vm108_vm1 = vcmp.eq.s32.totalorder %v1167_v43, %v80_v46 }
  0x5e   :  { %v865_v48 = vsel %vm108_vm1, 1.0, %v1018_v47 }
  0x5f   :  { %897 = vmatmul.msk.f32.vlgmr.msra.gmra.mxu3 %vm247_vm0, %v865_v48 }
  0x64   :  { %v176_v50 = vpop.permute.xlu2 %175 }
  0x65   :  { %vm204_vm8 = vcmp.eq.s32.totalorder %v1167_v43, %v176_v50 }
  0x66   :  { %v881_v2 = vsel %vm204_vm8, 1.0, %v1018_v47 }
  0x6c   :  { %v83_v51 = vpop.permute.xlu2 %82 }
  0x6d   :  { %vm109_vm2 = vcmp.eq.s32.totalorder %v1167_v43, %v83_v51 }
  0x6e   :  { %v866_v52 = vsel %vm109_vm2, 1.0, %v1018_v47 }
  0x6f   :  { %898 = vmatmul.msk.f32.gmra.mxu3 %vm247_vm0, %v866_v52 }
  0x74   :  { %v155_v58 = vpop.permute.xlu2 %154 }
  0x75   :  { %v56_v53 = vpop.permute.xlu1 %55  ;;  %v53_v54 = vpop.permute.xlu0 %52  ;;  %vm197_vm11 = vcmp.eq.s32.totalorder %v1167_v43, %v155_v58 }
  0x76   :  { %vm99_vm3 = vcmp.eq.s32.totalorder %v1167_v43, %v53_v54  ;;  %vm100_vm4 = vcmp.eq.s32.totalorder %v1167_v43, %v56_v53  ;;  %v874_v6 = vsel %vm197_vm11, 1.0, %v1018_v47 }
  0x77   :  { %v856_v55 = vsel %vm99_vm3, 1.0, %v1018_v47  ;;  %v857_v59 = vsel %vm100_vm4, 1.0, %v1018_v47 }
  0x78   :  { %888 = vmatmul.msk.f32.vlgmr.msra.gmra.mxu0 %vm247_vm0, %v856_v55 }
  0x7c   :  { %v65_v3 = vpop.permute.xlu2 %64 }
  0x7d   :  { %v149_v56 = vpop.permute.xlu1 %148  ;;  %v173_v57 = vpop.permute.xlu0 %172  ;;  %vm103_vm14 = vcmp.eq.s32.totalorder %v1167_v43, %v65_v3 }
  0x7e   :  { %vm195_vm6 = vcmp.eq.s32.totalorder %v1167_v43, %v149_v56  ;;  %vm203_vm7 = vcmp.eq.s32.totalorder %v1167_v43, %v173_v57  ;;  %v860_v12 = vsel %vm103_vm14, 1.0, %v1018_v47 }
  0x7f   :  { %v872_v60 = vsel %vm195_vm6, 1.0, %v1018_v47  ;;  %v880_v61 = vsel %vm203_vm7, 1.0, %v1018_v47 }
  0x80   :  { %889 = vmatmul.msk.f32.gmra.mxu0 %vm247_vm0, %v857_v59  ;;  %904 = vmatmul.msk.f32.vlgmr.msra.gmra.mxu1 %vm369_vm5, %v872_v60 }
  0x81   :  { %912 = vmatmul.msk.f32.vlgmr.msra.gmra.mxu2 %vm369_vm5, %v880_v61 }
  0x84   :  { %v185_v9 = vpop.permute.xlu2 %184 }
  0x85   :  { %v152_v62 = vpop.permute.xlu1 %151  ;;  %v59_v63 = vpop.permute.xlu0 %58  ;;  %vm207_vm2 = vcmp.eq.s32.totalorder %v1167_v43, %v185_v9 }
  0x86   :  { %vm196_vm9 = vcmp.eq.s32.totalorder %v1167_v43, %v152_v62  ;;  %vm101_vm10 = vcmp.eq.s32.totalorder %v1167_v43, %v59_v63  ;;  %v884_v20 = vsel %vm207_vm2, 1.0, %v1018_v47 }
  0x87   :  { %v873_v0 = vsel %vm196_vm9, 1.0, %v1018_v47  ;;  %v858_v1 = vsel %vm101_vm10, 1.0, %v1018_v47 }
  0x88   :  { %890 = vmatmul.msk.f32.gmra.mxu0 %vm247_vm0, %v858_v1  ;;  %905 = vmatmul.msk.f32.gmra.mxu1 %vm369_vm5, %v873_v0 }
  0x89   :  { %913 = vmatmul.msk.f32.gmra.mxu2 %vm369_vm5, %v881_v2 }
  0x8c   :  { %v92_v15 = vpop.permute.xlu2 %91 }
  0x8d   :  { %v62_v4 = vpop.permute.xlu1 %61  ;;  %v179_v5 = vpop.permute.xlu0 %178  ;;  %vm112_vm6 = vcmp.eq.s32.totalorder %v1167_v43, %v92_v15 }
  0x8e   :  { %vm102_vm12 = vcmp.eq.s32.totalorder %v1167_v43, %v62_v4  ;;  %vm205_vm13 = vcmp.eq.s32.totalorder %v1167_v43, %v179_v5  ;;  %v869_v24 = vsel %vm112_vm6, 1.0, %v1018_v47  ;;  %vm835_vm6 = vcmask 7168  }
  0x8f   :  { %v859_v7 = vsel %vm102_vm12, 1.0, %v1018_v47  ;;  %v882_v8 = vsel %vm205_vm13, 1.0, %v1018_v47 }
  0x90   :  { %891 = vmatmul.msk.f32.gmra.mxu0 %vm247_vm0, %v859_v7  ;;  %906 = vmatmul.msk.f32.gmra.mxu1 %vm369_vm5, %v874_v6 }
  0x91   :  { %914 = vmatmul.msk.f32.gmra.mxu2 %vm369_vm5, %v882_v8 }
  0x94   :  { %v164_v23 = vpop.permute.xlu2 %163 }
  0x95   :  { %v182_v10 = vpop.permute.xlu1 %181  ;;  %v86_v11 = vpop.permute.xlu0 %85  ;;  %vm200_vm9 = vcmp.eq.s32.totalorder %v1167_v43, %v164_v23 }
  0x96   :  { %vm206_vm15 = vcmp.eq.s32.totalorder %v1167_v43, %v182_v10  ;;  %vm110_vm1 = vcmp.eq.s32.totalorder %v1167_v43, %v86_v11  ;;  %v877_v31 = vsel %vm200_vm9, 1.0, %v1018_v47 }
  0x97   :  { %v883_v13 = vsel %vm206_vm15, 1.0, %v1018_v47  ;;  %v867_v14 = vsel %vm110_vm1, 1.0, %v1018_v47 }
  0x98   :  { %892 = vmatmul.msk.f32.gmra.mxu0 %vm247_vm0, %v860_v12  ;;  %899 = vmatmul.msk.f32.gmra.mxu3 %vm247_vm0, %v867_v14 }
  0x99   :  { %915 = vmatmul.msk.f32.gmra.mxu2 %vm369_vm5, %v883_v13 }
  0x9c   :  { %v74_v32 = vpop.permute.xlu2 %73 }
  0x9d   :  { %v89_v16 = vpop.permute.xlu1 %88  ;;  %v158_v17 = vpop.permute.xlu0 %157  ;;  %vm106_vm12 = vcmp.eq.s32.totalorder %v1167_v43, %v74_v32 }
  0x9e   :  { %vm111_vm3 = vcmp.eq.s32.totalorder %v1167_v43, %v89_v16  ;;  %vm198_vm4 = vcmp.eq.s32.totalorder %v1167_v43, %v158_v17  ;;  %v863_v35 = vsel %vm106_vm12, 1.0, %v1018_v47 }
  0x9f   :  { %v868_v18 = vsel %vm111_vm3, 1.0, %v1018_v47  ;;  %v875_v19 = vsel %vm198_vm4, 1.0, %v1018_v47 }
  0xa0   :  { %900 = vmatmul.msk.f32.gmra.mxu3 %vm247_vm0, %v868_v18  ;;  %907 = vmatmul.msk.f32.gmra.mxu1 %vm369_vm5, %v875_v19 }
  0xa1   :  { %916 = vmatmul.msk.f32.gmra.mxu2 %vm369_vm5, %v884_v20 }
  0xa4   :  { %v194_v38 = vpop.permute.xlu2 %193 }
  0xa5   :  { %v161_v21 = vpop.permute.xlu1 %160  ;;  %v68_v22 = vpop.permute.xlu0 %67  ;;  %vm210_vm15 = vcmp.eq.s32.totalorder %v1167_v43, %v194_v38 }
  0xa6   :  { %vm199_vm7 = vcmp.eq.s32.totalorder %v1167_v43, %v161_v21  ;;  %vm104_vm8 = vcmp.eq.s32.totalorder %v1167_v43, %v68_v22  ;;  %v887_v44 = vsel %vm210_vm15, 1.0, %v1018_v47 }
  0xa7   :  { %v876_v25 = vsel %vm199_vm7, 1.0, %v1018_v47  ;;  %v861_v26 = vsel %vm104_vm8, 1.0, %v1018_v47 }
  0xa8   :  { %893 = vmatmul.msk.f32.gmra.mxu0 %vm247_vm0, %v861_v26  ;;  %901 = vmatmul.msk.f32.gmra.mxu3 %vm247_vm0, %v869_v24 }
  0xa9   :  { %908 = vmatmul.msk.f32.gmra.mxu1 %vm369_vm5, %v876_v25 }
  0xad   :  { %v71_v27 = vpop.permute.xlu1 %70  ;;  %v188_v28 = vpop.permute.xlu0 %187 }
  0xae   :  { %vm105_vm10 = vcmp.eq.s32.totalorder %v1167_v43, %v71_v27  ;;  %vm208_vm11 = vcmp.eq.s32.totalorder %v1167_v43, %v188_v28 }
  0xaf   :  { %v862_v29 = vsel %vm105_vm10, 1.0, %v1018_v47  ;;  %v885_v30 = vsel %vm208_vm11, 1.0, %v1018_v47 }
  0xb0   :  { %894 = vmatmul.msk.f32.gmra.mxu0 %vm247_vm0, %v862_v29  ;;  %917 = vmatmul.msk.f32.gmra.mxu2 %vm369_vm5, %v885_v30 }
  0xb1   :  { %909 = vmatmul.msk.f32.gmra.mxu1 %vm369_vm5, %v877_v31 }
  0xb5   :  { %v191_v33 = vpop.permute.xlu1 %190  ;;  %v95_v34 = vpop.permute.xlu0 %94 }
  0xb6   :  { %vm209_vm13 = vcmp.eq.s32.totalorder %v1167_v43, %v191_v33  ;;  %vm113_vm14 = vcmp.eq.s32.totalorder %v1167_v43, %v95_v34 }
  0xb7   :  { %v886_v36 = vsel %vm209_vm13, 1.0, %v1018_v47  ;;  %v870_v37 = vsel %vm113_vm14, 1.0, %v1018_v47 }
  0xb8   :  { %895 = vmatmul.msk.f32.gmra.mxu0 %vm247_vm0, %v863_v35  ;;  %902 = vmatmul.msk.f32.gmra.mxu3 %vm247_vm0, %v870_v37 }
  0xb9   :  { %918 = vmatmul.msk.f32.gmra.mxu2 %vm369_vm5, %v886_v36 }
  0xbd   :  { %v98_v39 = vpop.permute.xlu1 %97  ;;  %v167_v40 = vpop.permute.xlu0 %166 }
  0xbe   :  { %vm114_vm1 = vcmp.eq.s32.totalorder %v1167_v43, %v98_v39  ;;  %vm201_vm2 = vcmp.eq.s32.totalorder %v1167_v43, %v167_v40 }
  0xbf   :  { %v871_v41 = vsel %vm114_vm1, 1.0, %v1018_v47  ;;  %v878_v42 = vsel %vm201_vm2, 1.0, %v1018_v47 }
  0xc0   :  { %903 = vmatmul.msk.f32.gmra.mxu3 %vm247_vm0, %v871_v41  ;;  %910 = vmatmul.msk.f32.gmra.mxu1 %vm369_vm5, %v878_v42 }
  0xc1   :  { %919 = vmatmul.msk.f32.gmra.mxu2 %vm369_vm5, %v887_v44 }
  0xc5   :  { %v170_v45 = vpop.permute.xlu1 %169  ;;  %v77_v46 = vpop.permute.xlu0 %76 }
  0xc6   :  { %vm202_vm3 = vcmp.eq.s32.totalorder %v1167_v43, %v170_v45  ;;  %vm107_vm4 = vcmp.eq.s32.totalorder %v1167_v43, %v77_v46 }
  0xc7   :  { %v879_v48 = vsel %vm202_vm3, 1.0, %v1018_v47  ;;  %v864_v49 = vsel %vm107_vm4, 1.0, %v1018_v47 }
  0xc8   :  { %896 = vmatmul.msk.f32.gmra.mxu0 %vm247_vm0, %v864_v49  ;;  %911 = vmatmul.msk.f32.gmra.mxu1 %vm369_vm5, %v879_v48 }
  0xe2   :  { %v340_v57 = vpop.f32.mrf.mxu3 }
  0xf2   :  { %v343_v47 = vpop.f32.mrf.mxu3 }
  0xf5   :  { %v313_v50 = vpop.f32.mrf.mxu0 }
  0xfd   :  { %v435_v51 = vpop.f32.mrf.mxu1  ;;  %v316_v53 = vpop.f32.mrf.mxu0 }
  0xfe   :  { %v483_v52 = vmul.f32 %v435_v51, %v313_v50 }
 0x100   :  { %499 = vadd.xlane.f32.xlu2 %v483_v52 }
 0x104   :  { %v459_v54 = vpop.f32.mrf.mxu2 }
 0x105   :  { %v438_v55 = vpop.f32.mrf.mxu1  ;;  %v319_v43 = vpop.f32.mrf.mxu0 }
 0x106   :  { %v484_v56 = vmul.f32 %v438_v55, %v316_v53 }
 0x108   :  { %501 = vadd.xlane.f32.xlu0 %v484_v56 }
 0x10c   :  { %v462_v58 = vpop.f32.mrf.mxu2 }
 0x10d   :  { %v492_v59 = vmul.f32 %v462_v58, %v340_v57  ;;  %v441_v60 = vpop.f32.mrf.mxu1  ;;  %v322_v0 = vpop.f32.mrf.mxu0 }
 0x10e   :  { %v485_v62 = vmul.f32 %v441_v60, %v319_v43 }
 0x10f   :  { %517 = vadd.xlane.f32.xlu1 %v492_v59 }
 0x114   :  { %v465_v61 = vpop.f32.mrf.mxu2 }
 0x115   :  { %v493_v63 = vmul.f32 %v465_v61, %v343_v47  ;;  %v325_v6 = vpop.f32.mrf.mxu0 }
 0x117   :  { %503 = vadd.xlane.f32.xlu1 %v485_v62  ;;  %519 = vadd.xlane.f32.xlu2 %v493_v63 }
 0x11b   :  { %v346_v1 = vpop.f32.mrf.mxu3 }
 0x11c   :  { %v468_v2 = vpop.f32.mrf.mxu2 }
 0x11d   :  { %v494_v3 = vmul.f32 %v468_v2, %v346_v1  ;;  %v444_v4 = vpop.f32.mrf.mxu1 }
 0x11e   :  { %v486_v5 = vmul.f32 %v444_v4, %v322_v0 }
 0x11f   :  { %521 = vadd.xlane.f32.xlu0 %v494_v3 }
 0x120   :  { %505 = vadd.xlane.f32.xlu2 %v486_v5 }
 0x123   :  { %v349_v7 = vpop.f32.mrf.mxu3 }
 0x124   :  { %v471_v8 = vpop.f32.mrf.mxu2 }
 0x125   :  { %v495_v9 = vmul.f32 %v471_v8, %v349_v7  ;;  %v328_v12 = vpop.f32.mrf.mxu0 }
 0x126   :  { %v447_v10 = vpop.f32.mrf.mxu1 }
 0x127   :  { %v487_v11 = vmul.f32 %v447_v10, %v325_v6  ;;  %523 = vadd.xlane.f32.xlu1 %v495_v9 }
 0x129   :  { %507 = vadd.xlane.f32.xlu2 %v487_v11 }
 0x12b   :  { %v352_v15 = vpop.f32.mrf.mxu3 }
 0x12d   :  { %v331_v16 = vpop.f32.mrf.mxu0 }
 0x12e   :  { %v450_v13 = vpop.f32.mrf.mxu1 }
 0x12f   :  { %v488_v14 = vmul.f32 %v450_v13, %v328_v12 }
 0x131   :  { %509 = vadd.xlane.f32.xlu0 %v488_v14 }
 0x133   :  { %v474_v17 = vpop.f32.mrf.mxu2 }
 0x134   :  { %v496_v30 = vmul.f32 %v474_v17, %v352_v15 }
 0x135   :  { %v334_v20 = vpop.f32.mrf.mxu0 }
 0x13b   :  { %v355_v18 = vpop.f32.mrf.mxu3 }
 0x13c   :  { %v477_v19 = vpop.f32.mrf.mxu2 }
 0x13d   :  { %v453_v21 = vpop.f32.mrf.mxu1  ;;  %v497_v31 = vmul.f32 %v477_v19, %v355_v18 }
 0x13e   :  { %v489_v22 = vmul.f32 %v453_v21, %v331_v16 }
 0x140   :  { %511 = vadd.xlane.f32.xlu1 %v489_v22 }
 0x143   :  { %v358_v23 = vpop.f32.mrf.mxu3 }
 0x144   :  { %v480_v24 = vpop.f32.mrf.mxu2 }
 0x145   :  { %v337_v25 = vpop.f32.mrf.mxu0  ;;  %v456_v26 = vpop.f32.mrf.mxu1  ;;  %v498_v27 = vmul.f32 %v480_v24, %v358_v23 }
 0x146   :  { %v491_v28 = vmul.f32 %v459_v54, %v337_v25  ;;  %v490_v29 = vmul.f32 %v456_v26, %v334_v20 }
 0x148   :  { %529 = vadd.xlane.f32.xlu1 %v498_v27  ;;  %513 = vadd.xlane.f32.xlu2 %v490_v29 }
 0x149   :  { %515 = vadd.xlane.f32.xlu0 %v491_v28 }
 0x150   :  { %525 = vadd.xlane.f32.xlu2 %v496_v30 }
 0x151   :  { %527 = vadd.xlane.f32.xlu0 %v497_v31 }
 0x173   :  { %v500_v32 = vpop.xlane.xlu2 %499 }
 0x174   :  { %v920_v33 = vmul.f32 -1.442695, %v500_v32 }
 0x176   :  { %953 = vpow2.f32 %v920_v33 }
 0x17b   :  { %v502_v34 = vpop.xlane.xlu0 %501 }
 0x17c   :  { %v954_v35 = vpop.eup %953  ;;  %v921_v36 = vmul.f32 -1.442695, %v502_v34 }
 0x17d   :  { %v579_v37 = vadd.f32 1.0, %v954_v35 }
 0x17e   :  { %955 = vpow2.f32 %v921_v36 }
 0x17f   :  { %957 = vrcp.f32 %v579_v37  ;;  %v606_v46 = vand.u32 2147483648, %v579_v37  ;;  %v604_v49 = vand.u32 2147483647, %v579_v37  ;;  %vm600_vm5 = vweird.f32 %v579_v37 }
 0x181   :  { %v607_v58 = vor.u32 1.1754944e-38, %v606_v46  ;;  %vm605_vm8 = vcmp.eq.f32.partialorder %v604_v49, 8.507059e+37 }
 0x182   :  { %v518_v38 = vpop.xlane.xlu1 %517 }
 0x183   :  { %v929_v39 = vmul.f32 -1.442695, %v518_v38 }
 0x184   :  { %v956_v40 = vpop.eup %955 }
 0x185   :  { %v958_v41 = vpop.eup %957  ;;  %v580_v42 = vadd.f32 1.0, %v956_v40  ;;  %959 = vpow2.f32 %v929_v39 }
 0x186   :  { %v596_v44 = vmul.f32 %v958_v41, %v579_v37  ;;  %vm601_vm0 = vweird.f32 %v958_v41 }
 0x187   :  { %961 = vrcp.f32 %v580_v42  ;;  %vm602_vm7 = vmor %vm600_vm5, %vm601_vm0  ;;  %v621_v61 = vand.u32 2147483648, %v580_v42  ;;  %v619_v63 = vand.u32 2147483647, %v580_v42  ;;  %vm615_vm10 = vweird.f32 %v580_v42 }
 0x188   :  { %v597_v45 = vsub.f32 1.0, %v596_v44 }
 0x189   :  { %v622_v8 = vor.u32 1.1754944e-38, %v621_v61  ;;  %vm620_vm12 = vcmp.eq.f32.partialorder %v619_v63, 8.507059e+37 }
 0x18a   :  { %v598_v48 = vmul.f32 %v958_v41, %v597_v45  ;;  %v504_v50 = vpop.xlane.xlu1 %503  ;;  %v520_v51 = vpop.xlane.xlu2 %519 }
 0x18b   :  { %v960_v52 = vpop.eup %959  ;;  %v922_v53 = vmul.f32 -1.442695, %v504_v50  ;;  %v930_v56 = vmul.f32 -1.442695, %v520_v51 }
 0x18c   :  { %v599_v54 = vadd.f32 %v958_v41, %v598_v48  ;;  %v588_v55 = vadd.f32 1.0, %v960_v52 }
 0x18d   :  { %v962_v57 = vpop.eup %961  ;;  %963 = vpow2.f32 %v922_v53 }
 0x18e   :  { %v603_v43 = vsel %vm602_vm7, %v958_v41, %v599_v54  ;;  %v611_v59 = vmul.f32 %v962_v57, %v580_v42  ;;  %965 = vrcp.f32 %v588_v55  ;;  %vm616_vm9 = vweird.f32 %v962_v57 }
 0x18f   :  { %v608_v60 = vsel %vm605_vm8, %v607_v58, %v603_v43  ;;  %967 = vpow2.f32 %v930_v56  ;;  %vm617_vm11 = vmor %vm615_vm10, %vm616_vm9  ;;  %v741_v15 = vand.u32 2147483648, %v588_v55  ;;  %v739_v17 = vand.u32 2147483647, %v588_v55 }
 0x190   :  { %836 = vst.msk [vmem:[%s1407_s4] sm:$0xff] %vm835_vm6, %v608_v60  ;;  %v612_v47 = vsub.f32 1.0, %v611_v59  ;;  %vm735_vm14 = vweird.f32 %v588_v55 }
 0x191   :  { %v742_v23 = vor.u32 1.1754944e-38, %v741_v15  ;;  %vm740_vm1 = vcmp.eq.f32.partialorder %v739_v17, 8.507059e+37 }
 0x192   :  { %v613_v62 = vmul.f32 %v962_v57, %v612_v47  ;;  %v522_v0 = vpop.xlane.xlu0 %521 }
 0x193   :  { %v964_v1 = vpop.eup %963  ;;  %v931_v2 = vmul.f32 -1.442695, %v522_v0  ;;  %v506_v3 = vpop.xlane.xlu2 %505 }
 0x194   :  { %v966_v4 = vpop.eup %965  ;;  %v614_v5 = vadd.f32 %v962_v57, %v613_v62  ;;  %v1278_v6 = vadd.f32 1.0, %v964_v1  ;;  %v923_v7 = vmul.f32 -1.442695, %v506_v3 }
 0x195   :  { %v731_v9 = vmul.f32 %v966_v4, %v588_v55  ;;  %969 = vpow2.f32 %v931_v2  ;;  %v968_v10 = vpop.eup %967  ;;  %vm736_vm13 = vweird.f32 %v966_v4 }
 0x196   :  { %v618_v11 = vsel %vm617_vm11, %v962_v57, %v614_v5  ;;  %971 = vrcp.f32 %v1278_v6  ;;  %v1281_v14 = vadd.f32 1.0, %v968_v10  ;;  %vm737_vm15 = vmor %vm735_vm14, %vm736_vm13  ;;  %v636_v32 = vand.u32 2147483648, %v1278_v6 }
 0x197   :  { %v623_v12 = vsel %vm620_vm12, %v622_v8, %v618_v11  ;;  %v732_v13 = vsub.f32 1.0, %v731_v9  ;;  %973 = vpow2.f32 %v923_v7  ;;  %v634_v37 = vand.u32 2147483647, %v1278_v6 }
 0x198   :  { %837 = vst.msk [vmem:[%s1407_s4 + $0x8] sm:$0xff] %vm835_vm6, %v623_v12  ;;  %975 = vrcp.f32 %v1281_v14  ;;  %vm630_vm3 = vweird.f32 %v1278_v6  ;;  %v637_v41 = vor.u32 1.1754944e-38, %v636_v32  ;;  %v756_v42 = vand.u32 2147483648, %v1281_v14 }
 0x199   :  { %v733_v16 = vmul.f32 %v966_v4, %v732_v13  ;;  %v754_v46 = vand.u32 2147483647, %v1281_v14  ;;  %vm635_vm5 = vcmp.eq.f32.partialorder %v634_v37, 8.507059e+37  ;;  %vm750_vm7 = vweird.f32 %v1281_v14 }
 0x19a   :  { %v524_v18 = vpop.xlane.xlu1 %523  ;;  %v757_v56 = vor.u32 1.1754944e-38, %v756_v42 }
 0x19b   :  { %v970_v19 = vpop.eup %969  ;;  %v734_v20 = vadd.f32 %v966_v4, %v733_v16  ;;  %v932_v21 = vmul.f32 -1.442695, %v524_v18  ;;  %vm755_vm9 = vcmp.eq.f32.partialorder %v754_v46, 8.507059e+37 }
 0x19c   :  { %v972_v22 = vpop.eup %971  ;;  %v1288_v24 = vadd.f32 1.0, %v970_v19  ;;  %v508_v25 = vpop.xlane.xlu2 %507 }
 0x19d   :  { %v738_v26 = vsel %vm737_vm15, %v966_v4, %v734_v20  ;;  %v626_v27 = vmul.f32 %v972_v22, %v1278_v6  ;;  %977 = vpow2.f32 %v932_v21  ;;  %v974_v28 = vpop.eup %973  ;;  %v924_v34 = vmul.f32 -1.442695, %v508_v25 }
 0x19e   :  { %v743_v29 = vsel %vm740_vm1, %v742_v23, %v738_v26  ;;  %979 = vrcp.f32 %v1288_v24  ;;  %v976_v30 = vpop.eup %975  ;;  %v1297_v33 = vadd.f32 1.0, %v974_v28  ;;  %vm631_vm2 = vweird.f32 %v972_v22 }
 0x19f   :  { %845 = vst.msk [vmem:[%s1407_s4 + $0x48] sm:$0xff] %vm835_vm6, %v743_v29  ;;  %v627_v31 = vsub.f32 1.0, %v626_v27  ;;  %v746_v35 = vmul.f32 %v976_v30, %v1281_v14  ;;  %vm632_vm4 = vmor %vm630_vm3, %vm631_vm2  ;;  %vm751_vm0 = vweird.f32 %v976_v30  ;;  %v771_v58 = vand.u32 2147483648, %v1288_v24 }
 0x1a0   :  { %981 = vrcp.f32 %v1297_v33  ;;  %vm752_vm8 = vmor %vm750_vm7, %vm751_vm0  ;;  %v769_v62 = vand.u32 2147483647, %v1288_v24  ;;  %vm765_vm11 = vweird.f32 %v1288_v24  ;;  %v651_v3 = vand.u32 2147483648, %v1297_v33 }
 0x1a1   :  { %v628_v36 = vmul.f32 %v972_v22, %v627_v31  ;;  %v747_v38 = vsub.f32 1.0, %v746_v35  ;;  %983 = vpow2.f32 %v924_v34  ;;  %v772_v2 = vor.u32 1.1754944e-38, %v771_v58 }
 0x1a2   :  { %v649_v6 = vand.u32 2147483647, %v1297_v33  ;;  %vm770_vm14 = vcmp.eq.f32.partialorder %v769_v62, 8.507059e+37  ;;  %vm645_vm15 = vweird.f32 %v1297_v33  ;;  %v652_v13 = vor.u32 1.1754944e-38, %v651_v3 }
 0x1a3   :  { %v978_v39 = vpop.eup %977  ;;  %v629_v40 = vadd.f32 %v972_v22, %v628_v36  ;;  %v748_v45 = vmul.f32 %v976_v30, %v747_v38 }
 0x1a4   :  { %v980_v44 = vpop.eup %979  ;;  %v1305_v48 = vadd.f32 1.0, %v978_v39  ;;  %v510_v49 = vpop.xlane.xlu0 %509  ;;  %vm650_vm2 = vcmp.eq.f32.partialorder %v649_v6, 8.507059e+37 }
 0x1a5   :  { %v633_v50 = vsel %vm632_vm4, %v972_v22, %v629_v40  ;;  %v761_v51 = vmul.f32 %v980_v44, %v1288_v24  ;;  %v925_v52 = vmul.f32 -1.442695, %v510_v49  ;;  %v749_v54 = vadd.f32 %v976_v30, %v748_v45 }
 0x1a6   :  { %v638_v53 = vsel %vm635_vm5, %v637_v41, %v633_v50  ;;  %985 = vrcp.f32 %v1305_v48  ;;  %v982_v55 = vpop.eup %981  ;;  %vm766_vm10 = vweird.f32 %v980_v44  ;;  %v786_v16 = vand.u32 2147483648, %v1305_v48 }
 0x1a7   :  { %838 = vst.msk [vmem:[%s1407_s4 + $0x10] sm:$0xff] %vm835_vm6, %v638_v53  ;;  %v762_v57 = vsub.f32 1.0, %v761_v51  ;;  %987 = vpow2.f32 %v925_v52  ;;  %v984_v43 = vpop.eup %983  ;;  %v753_v59 = vsel %vm752_vm8, %v976_v30, %v749_v54  ;;  %v641_v60 = vmul.f32 %v982_v55, %v1297_v33  ;;  %vm767_vm12 = vmor %vm765_vm11, %vm766_vm10 }
 0x1a8   :  { %v758_v47 = vsel %vm755_vm9, %v757_v56, %v753_v59  ;;  %v583_v0 = vadd.f32 1.0, %v984_v43  ;;  %vm646_vm13 = vweird.f32 %v982_v55  ;;  %v784_v19 = vand.u32 2147483647, %v1305_v48 }
 0x1a9   :  { %v763_v61 = vmul.f32 %v980_v44, %v762_v57  ;;  %846 = vst.msk [vmem:[%s1407_s4 + $0x50] sm:$0xff] %vm835_vm6, %v758_v47  ;;  %v642_v63 = vsub.f32 1.0, %v641_v60  ;;  %vm647_vm1 = vmor %vm645_vm15, %vm646_vm13  ;;  %vm780_vm4 = vweird.f32 %v1305_v48  ;;  %v787_v24 = vor.u32 1.1754944e-38, %v786_v16 }
 0x1aa   :  { %989 = vrcp.f32 %v583_v0  ;;  %vm785_vm5 = vcmp.eq.f32.partialorder %v784_v19, 8.507059e+37  ;;  %v664_v30 = vand.u32 2147483647, %v583_v0  ;;  %v666_v31 = vand.u32 2147483648, %v583_v0 }
 0x1ab   :  { %v764_v1 = vadd.f32 %v980_v44, %v763_v61  ;;  %v643_v5 = vmul.f32 %v982_v55, %v642_v63  ;;  %vm660_vm8 = vweird.f32 %v583_v0 }
 0x1ac   :  { %v986_v4 = vpop.eup %985  ;;  %vm665_vm10 = vcmp.eq.f32.partialorder %v664_v30, 8.507059e+37  ;;  %v667_v36 = vor.u32 1.1754944e-38, %v666_v31 }
 0x1ad   :  { %v988_v7 = vpop.eup %987  ;;  %v768_v8 = vsel %vm767_vm12, %v980_v44, %v764_v1  ;;  %v776_v9 = vmul.f32 %v986_v4, %v1305_v48  ;;  %v644_v11 = vadd.f32 %v982_v55, %v643_v5  ;;  %vm781_vm3 = vweird.f32 %v986_v4 }
 0x1ae   :  { %v773_v10 = vsel %vm770_vm14, %v772_v2, %v768_v8  ;;  %v584_v12 = vadd.f32 1.0, %v988_v7  ;;  %vm782_vm0 = vmor %vm780_vm4, %vm781_vm3 }
 0x1af   :  { %847 = vst.msk [vmem:[%s1407_s4 + $0x58] sm:$0xff] %vm835_vm6, %v773_v10  ;;  %v777_v14 = vsub.f32 1.0, %v776_v9  ;;  %v648_v15 = vsel %vm647_vm1, %v982_v55, %v644_v11 }
 0x1b0   :  { %991 = vrcp.f32 %v584_v12  ;;  %v653_v17 = vsel %vm650_vm2, %v652_v13, %v648_v15  ;;  %v990_v20 = vpop.eup %989  ;;  %v681_v37 = vand.u32 2147483648, %v584_v12  ;;  %v679_v40 = vand.u32 2147483647, %v584_v12 }
 0x1b1   :  { %v778_v18 = vmul.f32 %v986_v4, %v777_v14  ;;  %839 = vst.msk [vmem:[%s1407_s4 + $0x18] sm:$0xff] %vm835_vm6, %v653_v17  ;;  %v656_v22 = vmul.f32 %v990_v20, %v583_v0  ;;  %vm661_vm7 = vweird.f32 %v990_v20  ;;  %vm675_vm12 = vweird.f32 %v584_v12 }
 0x1b2   :  { %vm662_vm9 = vmor %vm660_vm8, %vm661_vm7  ;;  %v682_v53 = vor.u32 1.1754944e-38, %v681_v37  ;;  %vm680_vm14 = vcmp.eq.f32.partialorder %v679_v40, 8.507059e+37 }
 0x1b3   :  { %v779_v21 = vadd.f32 %v986_v4, %v778_v18  ;;  %v512_v23 = vpop.xlane.xlu1 %511  ;;  %v657_v27 = vsub.f32 1.0, %v656_v22 }
 0x1b4   :  { %v926_v25 = vmul.f32 -1.442695, %v512_v23 }
 0x1b5   :  { %v783_v26 = vsel %vm782_vm0, %v986_v4, %v779_v21  ;;  %v658_v32 = vmul.f32 %v990_v20, %v657_v27 }
 0x1b6   :  { %v992_v28 = vpop.eup %991  ;;  %v788_v29 = vsel %vm785_vm5, %v787_v24, %v783_v26  ;;  %993 = vpow2.f32 %v926_v25 }
 0x1b7   :  { %848 = vst.msk [vmem:[%s1407_s4 + $0x60] sm:$0xff] %vm835_vm6, %v788_v29  ;;  %v671_v33 = vmul.f32 %v992_v28, %v584_v12  ;;  %v659_v34 = vadd.f32 %v990_v20, %v658_v32  ;;  %vm676_vm11 = vweird.f32 %v992_v28 }
 0x1b8   :  { %vm677_vm13 = vmor %vm675_vm12, %vm676_vm11 }
 0x1b9   :  { %v672_v35 = vsub.f32 1.0, %v671_v33  ;;  %v663_v38 = vsel %vm662_vm9, %v990_v20, %v659_v34 }
 0x1ba   :  { %v668_v45 = vsel %vm665_vm10, %v667_v36, %v663_v38 }
 0x1bb   :  { %v673_v39 = vmul.f32 %v992_v28, %v672_v35  ;;  %v530_v41 = vpop.xlane.xlu1 %529  ;;  %v514_v42 = vpop.xlane.xlu2 %513  ;;  %840 = vst.msk [vmem:[%s1407_s4 + $0x20] sm:$0xff] %vm835_vm6, %v668_v45 }
 0x1bc   :  { %v994_v44 = vpop.eup %993  ;;  %v935_v46 = vmul.f32 -1.442695, %v530_v41  ;;  %v927_v48 = vmul.f32 -1.442695, %v514_v42  ;;  %v516_v49 = vpop.xlane.xlu0 %515 }
 0x1bd   :  { %v674_v50 = vadd.f32 %v992_v28, %v673_v39  ;;  %v585_v51 = vadd.f32 1.0, %v994_v44  ;;  %v928_v52 = vmul.f32 -1.442695, %v516_v49 }
 0x1be   :  { %995 = vpow2.f32 %v935_v46 }
 0x1bf   :  { %v678_v54 = vsel %vm677_vm13, %v992_v28, %v674_v50  ;;  %997 = vrcp.f32 %v585_v51  ;;  %v696_v3 = vand.u32 2147483648, %v585_v51  ;;  %v694_v5 = vand.u32 2147483647, %v585_v51 }
 0x1c0   :  { %v683_v55 = vsel %vm680_vm14, %v682_v53, %v678_v54  ;;  %999 = vpow2.f32 %v927_v48  ;;  %vm690_vm1 = vweird.f32 %v585_v51 }
 0x1c1   :  { %841 = vst.msk [vmem:[%s1407_s4 + $0x28] sm:$0xff] %vm835_vm6, %v683_v55  ;;  %1001 = vpow2.f32 %v928_v52  ;;  %v697_v9 = vor.u32 1.1754944e-38, %v696_v3  ;;  %vm695_vm3 = vcmp.eq.f32.partialorder %v694_v5, 8.507059e+37 }
 0x1c3   :  { %v526_v56 = vpop.xlane.xlu2 %525 }
 0x1c4   :  { %v996_v57 = vpop.eup %995  ;;  %v933_v58 = vmul.f32 -1.442695, %v526_v56  ;;  %v528_v43 = vpop.xlane.xlu0 %527 }
 0x1c5   :  { %v998_v59 = vpop.eup %997  ;;  %v594_v60 = vadd.f32 1.0, %v996_v57  ;;  %v934_v47 = vmul.f32 -1.442695, %v528_v43 }
 0x1c6   :  { %v1000_v61 = vpop.eup %999  ;;  %v686_v62 = vmul.f32 %v998_v59, %v585_v51  ;;  %1003 = vpow2.f32 %v933_v58  ;;  %vm691_vm15 = vweird.f32 %v998_v59 }
 0x1c7   :  { %v1002_v63 = vpop.eup %1001  ;;  %1005 = vrcp.f32 %v594_v60  ;;  %v586_v1 = vadd.f32 1.0, %v1000_v61  ;;  %vm692_vm2 = vmor %vm690_vm1, %vm691_vm15  ;;  %v829_v10 = vand.u32 2147483647, %v594_v60  ;;  %v831_v15 = vand.u32 2147483648, %v594_v60 }
 0x1c8   :  { %v687_v0 = vsub.f32 1.0, %v686_v62  ;;  %v1349_v2 = vadd.f32 1.0, %v1002_v63  ;;  %1007 = vpow2.f32 %v934_v47  ;;  %vm825_vm4 = vweird.f32 %v594_v60 }
 0x1c9   :  { %1009 = vrcp.f32 %v586_v1  ;;  %vm1361_vm0 = vcmp.eq.f32.partialorder %v829_v10, 8.507059e+37  ;;  %v832_v24 = vor.u32 1.1754944e-38, %v831_v15  ;;  %v709_v27 = vand.u32 2147483647, %v586_v1 }
 0x1ca   :  { %v688_v4 = vmul.f32 %v998_v59, %v687_v0  ;;  %1011 = vrcp.f32 %v1349_v2  ;;  %v711_v28 = vand.u32 2147483648, %v586_v1  ;;  %v724_v31 = vand.u32 2147483647, %v1349_v2 }
 0x1cb   :  { %v726_v32 = vand.u32 2147483648, %v1349_v2  ;;  %vm705_vm8 = vweird.f32 %v586_v1  ;;  %vm720_vm10 = vweird.f32 %v1349_v2  ;;  %vm710_vm12 = vcmp.eq.f32.partialorder %v709_v27, 8.507059e+37 }
 0x1cc   :  { %v1004_v6 = vpop.eup %1003  ;;  %v689_v7 = vadd.f32 %v998_v59, %v688_v4  ;;  %v712_v40 = vor.u32 1.1754944e-38, %v711_v28  ;;  %vm725_vm14 = vcmp.eq.f32.partialorder %v724_v31, 8.507059e+37 }
 0x1cd   :  { %v1006_v8 = vpop.eup %1005  ;;  %v1352_v11 = vadd.f32 1.0, %v1004_v6  ;;  %v727_v42 = vor.u32 1.1754944e-38, %v726_v32 }
 0x1ce   :  { %v1008_v12 = vpop.eup %1007  ;;  %v693_v13 = vsel %vm692_vm2, %v998_v59, %v689_v7  ;;  %v821_v14 = vmul.f32 %v1006_v8, %v594_v60  ;;  %vm826_vm5 = vweird.f32 %v1006_v8 }
 0x1cf   :  { %v698_v16 = vsel %vm695_vm3, %v697_v9, %v693_v13  ;;  %1013 = vrcp.f32 %v1352_v11  ;;  %v1010_v17 = vpop.eup %1009  ;;  %v1359_v19 = vadd.f32 1.0, %v1008_v12  ;;  %vm827_vm7 = vmor %vm825_vm4, %vm826_vm5  ;;  %v799_v48 = vand.u32 2147483647, %v1352_v11 }
 0x1d0   :  { %842 = vst.msk [vmem:[%s1407_s4 + $0x30] sm:$0xff] %vm835_vm6, %v698_v16  ;;  %v822_v18 = vsub.f32 1.0, %v821_v14  ;;  %v1012_v20 = vpop.eup %1011  ;;  %v701_v22 = vmul.f32 %v1010_v17, %v586_v1  ;;  %vm706_vm9 = vweird.f32 %v1010_v17  ;;  %v801_v49 = vand.u32 2147483648, %v1352_v11 }
 0x1d1   :  { %v716_v25 = vmul.f32 %v1012_v20, %v1349_v2  ;;  %1015 = vrcp.f32 %v1359_v19  ;;  %vm721_vm11 = vweird.f32 %v1012_v20  ;;  %vm707_vm13 = vmor %vm705_vm8, %vm706_vm9  ;;  %vm795_vm2 = vweird.f32 %v1352_v11 }
 0x1d2   :  { %v823_v23 = vmul.f32 %v1006_v8, %v822_v18  ;;  %v702_v26 = vsub.f32 1.0, %v701_v22  ;;  %vm722_vm15 = vmor %vm720_vm10, %vm721_vm11  ;;  %vm800_vm4 = vcmp.eq.f32.partialorder %v799_v48, 8.507059e+37  ;;  %v802_v57 = vor.u32 1.1754944e-38, %v801_v49 }
 0x1d3   :  { %v717_v30 = vsub.f32 1.0, %v716_v25  ;;  %v816_v58 = vand.u32 2147483648, %v1359_v19  ;;  %v814_v60 = vand.u32 2147483647, %v1359_v19  ;;  %vm810_vm5 = vweird.f32 %v1359_v19 }
 0x1d4   :  { %v824_v29 = vadd.f32 %v1006_v8, %v823_v23  ;;  %v703_v34 = vmul.f32 %v1010_v17, %v702_v26 }
 0x1d5   :  { %v1014_v33 = vpop.eup %1013  ;;  %v718_v36 = vmul.f32 %v1012_v20, %v717_v30  ;;  %v817_v62 = vor.u32 1.1754944e-38, %v816_v58  ;;  %vm815_vm8 = vcmp.eq.f32.partialorder %v814_v60, 8.507059e+37 }
 0x1d6   :  { %v828_v35 = vsel %vm827_vm7, %v1006_v8, %v824_v29  ;;  %v791_v37 = vmul.f32 %v1014_v33, %v1352_v11  ;;  %v704_v39 = vadd.f32 %v1010_v17, %v703_v34  ;;  %vm796_vm1 = vweird.f32 %v1014_v33 }
 0x1d7   :  { %v833_v38 = vsel %vm1361_vm0, %v832_v24, %v828_v35  ;;  %v719_v41 = vadd.f32 %v1012_v20, %v718_v36  ;;  %v1016_v45 = vpop.eup %1015  ;;  %vm797_vm3 = vmor %vm795_vm2, %vm796_vm1 }
 0x1d8   :  { %851 = vst.msk [vmem:[%s1407_s4 + $0x78] sm:$0xff] %vm835_vm6, %v833_v38  ;;  %v792_v44 = vsub.f32 1.0, %v791_v37  ;;  %v708_v46 = vsel %vm707_vm13, %v1010_v17, %v704_v39  ;;  %v806_v53 = vmul.f32 %v1016_v45, %v1359_v19  ;;  %vm811_vm0 = vweird.f32 %v1016_v45 }
 0x1d9   :  { %v713_v50 = vsel %vm710_vm12, %v712_v40, %v708_v46  ;;  %v723_v51 = vsel %vm722_vm15, %v1012_v20, %v719_v41  ;;  %vm812_vm7 = vmor %vm810_vm5, %vm811_vm0 }
 0x1da   :  { %v793_v52 = vmul.f32 %v1014_v33, %v792_v44  ;;  %843 = vst.msk [vmem:[%s1407_s4 + $0x38] sm:$0xff] %vm835_vm6, %v713_v50  ;;  %v728_v54 = vsel %vm725_vm14, %v727_v42, %v723_v51  ;;  %v807_v56 = vsub.f32 1.0, %v806_v53 }
 0x1db   :  { %844 = vst.msk [vmem:[%s1407_s4 + $0x40] sm:$0xff] %vm835_vm6, %v728_v54 }
 0x1dc   :  { %v794_v55 = vadd.f32 %v1014_v33, %v793_v52  ;;  %v808_v59 = vmul.f32 %v1016_v45, %v807_v56 }
 0x1de   :  { %v798_v43 = vsel %vm797_vm3, %v1014_v33, %v794_v55  ;;  %v809_v61 = vadd.f32 %v1016_v45, %v808_v59 }
 0x1df   :  { %v803_v47 = vsel %vm800_vm4, %v802_v57, %v798_v43 }
 0x1e0   :  { %849 = vst.msk [vmem:[%s1407_s4 + $0x68] sm:$0xff] %vm835_vm6, %v803_v47  ;;  %v813_v63 = vsel %vm812_vm7, %v1016_v45, %v809_v61 }
 0x1e1   :  { %v818_v0 = vsel %vm815_vm8, %v817_v62, %v813_v63 }
 0x1e2   :  { %850 = vst.msk [vmem:[%s1407_s4 + $0x70] sm:$0xff] %vm835_vm6, %v818_v0 }

</bundles_post_ra>
